<compile_context>
chip_gen: v7x
topology: tpu7x:2x2x1
jax: 0.10.0
libtpu: 0.0.40
codegen_flags: <defaults>
</compile_context>

<pallas_src>
import functools

import jax
import jax.numpy as jnp
from jax import lax
from jax.experimental import pallas as pl
from jax.experimental.pallas import tpu as pltpu


def _feat_to_cv_kernel(width, x_ref, o_ref):
    # x_ref: (tr, 1, thw)   feature tile
    # o_ref: (tr, D, thw)   all D disparity slabs for this tile
    d = o_ref.shape[1]
    thw = o_ref.shape[2]
    x = x_ref[...]                                              # (tr, 1, thw)
    # Width coordinate of every flattened (h, w) lane position in this tile.
    lane = lax.broadcasted_iota(jnp.int32, (1, 1, thw), 2)
    pos = pl.program_id(1) * thw + lane                         # global h*w index
    wi = pos % width                                            # (1, 1, thw)
    d_idx = lax.broadcasted_iota(jnp.int32, (1, d, 1), 1)       # (1, D, 1)
    mask = wi >= d_idx                                          # (1, D, thw)
    zero = jnp.zeros((), dtype=o_ref.dtype)
    o_ref[...] = jnp.where(mask, x, zero).astype(o_ref.dtype)


def _vmem_budget():
    """Generation-aware (block budget bytes, vmem_limit_bytes)."""
    block, limit = 8 << 20, 32 << 20          # conservative fallback
    try:
        info = pltpu.get_tpu_info()
        vmem = getattr(info, "vmem_capacity_bytes", None)
        if vmem is not None:
            if vmem <= (64 << 20):            # v7x-class: 64 MiB per TC
                block, limit = 8 << 20, 30 << 20
            else:                             # v5e / v6e: 128 MiB physical
                block, limit = 16 << 20, 60 << 20
    except Exception:
        pass
    return block, limit


def _choose_tiles(nc, d, hw, itemsize, target_block_bytes):
    """Pick (row_tile, hw_tile) so input+output blocks stay within the budget
    (double-buffered by the pipeline) and the block obeys the (8, 128) rules."""
    pack = 8 * max(1, 4 // itemsize)          # sublane pack: f32 8, bf16 16, int8 32
    d_pad = -(-d // pack) * pack              # padded D inside the (tr, D, thw) block

    def lane_pad(v):
        return -(-v // 128) * 128

    # Bytes per (leading row, lane): output block (d_pad sublanes) + input
    # block (singleton second-minor dim padded to one sublane pack).
    unit = (d_pad + pack) * itemsize

    # Lane tile over the flattened H*W axis (multiple of 128 or full extent).
    if hw <= 128 or unit * lane_pad(hw) <= target_block_bytes:
        thw = hw
    else:
        thw = max(128, (target_block_bytes // unit) // 128 * 128)
        thw = min(thw, max(128, (hw // 128) * 128))

    # Row tile over the flattened N*C axis (leading dim: no alignment rule).
    row_bytes = unit * lane_pad(thw)
    tr = max(1, min(nc, target_block_bytes // row_bytes))
    n_row_tiles = -(-nc // tr)
    tr = -(-nc // n_row_tiles)                # balance tiles; no tiny tail tile
    return tr, thw


def feat_to_cv(x: jax.Array, maxdisp: int, *,
               target_block_bytes=None, vmem_limit_bytes=None) -> jax.Array:
    """Pallas equivalent of FeatToCV(maxdisp)(x) with x in NCHW layout."""
    d = int(maxdisp / 3)
    n, c, h, w = x.shape
    if d <= 0:
        return jnp.zeros((n, c, 0, h, w), x.dtype)

    nc, hw = n * c, h * w
    itemsize = jnp.dtype(x.dtype).itemsize

    auto_block, auto_limit = _vmem_budget()
    if target_block_bytes is None:
        target_block_bytes = auto_block
    if vmem_limit_bytes is None:
        vmem_limit_bytes = auto_limit

    tr, thw = _choose_tiles(nc, d, hw, itemsize, target_block_bytes)

    # Megacore (v7x): make sure the parallel grid has >= 2 steps so both
    # TensorCores issue HBM writes.  Prefer splitting rows (keeps lane-dense
    # full-width stores); split the lane axis only if there is a single row.
    if pl.cdiv(nc, tr) * pl.cdiv(hw, thw) < 2:
        if nc >= 2:
            tr = -(-nc // 2)
        elif hw > 128:
            thw = ((-(-hw // 2) + 127) // 128) * 128
    grid = (pl.cdiv(nc, tr), pl.cdiv(hw, thw))

    # Free, contiguity-preserving reshape.
    x3 = x.reshape(nc, 1, hw)

    out_flat = pl.pallas_call(
        functools.partial(_feat_to_cv_kernel, w),
        out_shape=jax.ShapeDtypeStruct((nc, d, hw), x.dtype),
        grid_spec=pltpu.PrefetchScalarGridSpec(
            num_scalar_prefetch=0,
            grid=grid,
            in_specs=[
                # feature tile: read exactly once per (r, f) tile
                pl.BlockSpec((tr, 1, thw), lambda r, f: (r, 0, f)),
            ],
            # full D axis inside the block -> big lane-dense stores,
            # VMEM bounded by (tr, D, thw) regardless of input size
            out_specs=pl.BlockSpec((tr, d, thw), lambda r, f: (r, 0, f)),
        ),
        compiler_params=pltpu.CompilerParams(
            dimension_semantics=("parallel", "parallel"),
            vmem_limit_bytes=vmem_limit_bytes,
        ),
        cost_estimate=pl.CostEstimate(
            flops=0,
            transcendentals=0,
            bytes_accessed=(nc * hw + nc * d * hw) * itemsize,
        ),
    )(x3)

    # Free reshape back to the PyTorch NCDHW layout.
    return out_flat.reshape(n, c, d, h, w)


def feat_to_cv_ref(x: jax.Array, maxdisp: int) -> jax.Array:
    """Pure-JAX reference (mirrors the PyTorch loop)."""
    d = int(maxdisp / 3)
    n, c, h, w = x.shape
    if d <= 0:
        return jnp.zeros((n, c, 0, h, w), x.dtype)
    w_idx = jnp.arange(w)[None, None, None, None, :]  # (1,1,1,1,W)
    d_idx = jnp.arange(d)[None, None, :, None, None]  # (1,1,D,1,1)
    mask = w_idx >= d_idx                              # (1,1,D,1,W)
    return jnp.where(mask, x[:, :, None, :, :], 0).astype(x.dtype)


if __name__ == "__main__":
    key = jax.random.PRNGKey(0)

    # 1) Main test (matches the module's intended small-shape usage).
    #    Also exercises the forced >=2-step parallel grid split.
    N, C, H, W = 2, 4, 16, 16
    maxdisp = 12                       # -> D = int(12 / 3) = 4
    x = jax.random.normal(key, (N, C, H, W), dtype=jnp.float32)
    cost = jax.block_until_ready(feat_to_cv(x, maxdisp))
    ref = feat_to_cv_ref(x, maxdisp)
    assert cost.shape == (N, C, int(maxdisp / 3), H, W), cost.shape
    assert jnp.allclose(cost, ref), "mismatch vs reference (aligned case)"

    # 2) Ragged shapes: rows not a multiple of 8, lane width not a multiple
    #    of 128, odd D.
    x2 = jax.random.normal(jax.random.PRNGKey(0), (2, 5, 8, 20), dtype=jnp.float32)
    cost2 = jax.block_until_ready(feat_to_cv(x2, 9))
    assert jnp.allclose(cost2, feat_to_cv_ref(x2, 9)), "mismatch (ragged case)"

    # 3) Lane-axis tiling path (thw < hw, thw multiple of 128, partial tail
    #    block, width index crossing tile boundaries).  A tiny block budget
    #    forces the tiled branch deterministically on every TPU generation.
    x3 = jax.random.normal(jax.random.PRNGKey(1), (1, 2, 5, 70), dtype=jnp.float32)
    cost3 = jax.block_until_ready(feat_to_cv(x3, 60, target_block_bytes=16 << 10))
    assert jnp.allclose(cost3, feat_to_cv_ref(x3, 60)), "mismatch (tiled-hw case)"

    # 4) bf16 case (dtype-aware sublane-pack budgeting).
    x4 = jax.random.normal(jax.random.PRNGKey(2), (1, 3, 8, 20), dtype=jnp.bfloat16)
    cost4 = jax.block_until_ready(feat_to_cv(x4, 15))
    assert jnp.allclose(cost4.astype(jnp.float32),
                        feat_to_cv_ref(x4, 15).astype(jnp.float32)), "mismatch (bf16)"

    print("KERNEL_OK")
</pallas_src>

<mosaic_0001>
module attributes {stable_mosaic.version = 11 : i64} {
  func.func @_feat_to_cv_kernel(%arg0: i32, %arg1: i32, %arg2: memref<4x1x256xf32, #tpu.memory_space<vmem>>, %arg3: memref<4x4x256xf32, #tpu.memory_space<vmem>>) attributes {dimension_semantics = [#tpu.dimension_semantics<parallel>, #tpu.dimension_semantics<parallel>], iteration_bounds = array<i64: 2, 1>, scalar_prefetch = 0 : i64, scratch_operands = 0 : i64, tpu.core_type = #tpu.core_type<tc>, window_params = [{transform_indices = @transform_0, window_bounds = array<i64: 4, 1, 256>}, {transform_indices = @transform_1, window_bounds = array<i64: 4, 4, 256>}]} {
    %c0 = arith.constant 0 : index
    %c0_0 = arith.constant 0 : index
    %c0_1 = arith.constant 0 : index
    %0 = vector.load %arg2[%c0, %c0_0, %c0_1] : memref<4x1x256xf32, #tpu.memory_space<vmem>>, vector<4x1x256xf32>
    %1 = tpu.iota {dimensions = array<i32: 2>} : vector<1x1x256xi32>
    %c256_i32 = arith.constant 256 : i32
    %2 = arith.muli %arg1, %c256_i32 : i32
    %3 = vector.broadcast %2 : i32 to vector<1x1x256xi32>
    %4 = arith.addi %3, %1 : vector<1x1x256xi32>
    %c16_i32 = arith.constant 16 : i32
    %c0_i32 = arith.constant 0 : i32
    %5 = arith.cmpi eq, %c16_i32, %c0_i32 : i32
    %c1_i32 = arith.constant 1 : i32
    %6 = arith.select %5, %c1_i32, %c16_i32 : i32
    %7 = vector.broadcast %6 : i32 to vector<1x1x256xi32>
    %8 = arith.remsi %4, %7 : vector<1x1x256xi32>
    %c0_i32_2 = arith.constant 0 : i32
    %9 = vector.broadcast %c0_i32_2 : i32 to vector<1x1x256xi32>
    %10 = arith.cmpi ne, %8, %9 : vector<1x1x256xi32>
    %c0_i32_3 = arith.constant 0 : i32
    %11 = vector.broadcast %c0_i32_3 : i32 to vector<1x1x256xi32>
    %12 = arith.cmpi slt, %8, %11 : vector<1x1x256xi32>
    %c0_i32_4 = arith.constant 0 : i32
    %13 = arith.cmpi slt, %6, %c0_i32_4 : i32
    %14 = vector.broadcast %13 : i1 to vector<1x1x256xi1>
    %15 = vector.broadcast %14 : vector<1x1x256xi1> to vector<1x1x256xi1>
    %16 = arith.xori %12, %15 : vector<1x1x256xi1>
    %17 = arith.andi %16, %10 : vector<1x1x256xi1>
    %18 = vector.broadcast %6 : i32 to vector<1x1x256xi32>
    %19 = arith.addi %8, %18 : vector<1x1x256xi32>
    %20 = arith.select %17, %19, %8 : vector<1x1x256xi1>, vector<1x1x256xi32>
    %21 = tpu.iota {dimensions = array<i32: 1>} : vector<1x4x1xi32>
    %22 = vector.broadcast %20 : vector<1x1x256xi32> to vector<1x4x256xi32>
    %23 = vector.broadcast %21 : vector<1x4x1xi32> to vector<1x4x256xi32>
    %24 = arith.cmpi sge, %22, %23 : vector<1x4x256xi32>
    %cst = arith.constant 0.000000e+00 : f32
    %25 = vector.shape_cast %24 : vector<1x4x256xi1> to vector<1x4x256xi1>
    %26 = vector.broadcast %25 : vector<1x4x256xi1> to vector<4x4x256xi1>
    %27 = vector.shape_cast %0 : vector<4x1x256xf32> to vector<4x1x256xf32>
    %28 = vector.broadcast %27 : vector<4x1x256xf32> to vector<4x4x256xf32>
    %29 = vector.broadcast %cst : f32 to vector<4x4x256xf32>
    %30 = arith.select %26, %28, %29 : vector<4x4x256xi1>, vector<4x4x256xf32>
    %c0_5 = arith.constant 0 : index
    %c0_6 = arith.constant 0 : index
    %c0_7 = arith.constant 0 : index
    %31 = vector.load %arg3[%c0_5, %c0_6, %c0_7] : memref<4x4x256xf32, #tpu.memory_space<vmem>>, vector<4x4x256xf32>
    tpu.vector_store %arg3[%c0_5, %c0_6, %c0_7], %30 {strides = array<i32>} : memref<4x4x256xf32, #tpu.memory_space<vmem>>, vector<4x4x256xf32>,
    return
  }
  func.func @transform_0(%arg0: i32, %arg1: i32) -> (i32, i32, i32) {
    %c0_i32 = arith.constant 0 : i32
    %c0_i32_0 = arith.constant 0 : i32
    return %arg0, %c0_i32, %arg1 : i32, i32, i32
  }
  func.func @transform_1(%arg0: i32, %arg1: i32) -> (i32, i32, i32) {
    %c0_i32 = arith.constant 0 : i32
    %c0_i32_0 = arith.constant 0 : i32
    return %arg0, %c0_i32, %arg1 : i32, i32, i32
  }
}

</mosaic_0001>

<bundles_post_ra>
// kernel: tpu_custom_call.1
= control target key start
LH: loop header
LB: loop body
LE: loop exit
PB: predicated region body
PF: predicated region fallthrough
CT: control target
= control target key end

     0   :  { %6 = vsyncpa [#allocation3], 0  ;;  %s794_s0 = inlined_call_operand.hbm [shape: f32[8,1,256], index: 0, kind: input, shape index: {}]   ;;  %s795_s1 = inlined_call_operand.hbm [shape: f32[8,4,256], index: 1, kind: output, shape index: {}]  }
   0x1   :  { %8 = vsyncpa [#allocation3 + $0x1], 0 }
   0x2   :  { %9 = vsyncpa [#allocation4], 0 }
   0x3   :  { %11 = vsyncpa [#allocation4 + $0x1], 0  ;;  %s594_s6 = smov 0   ;;  %s596_s7 = smov 0  }
   0x4   :  { %s598_s8 = smov 0   ;;  %s600_s9 = smov 0  }
   0x5   :  { %s602_s10 = smov 0   ;;  %s604_s11 = smov 0  }
   0x6 LB: > { %s377_s12 = sadd.s32 4294967295, %s576_s11   ;;  %s378_s13 = sadd.s32 4294967294, %s576_s11   ;;  %s576_s11 = sphi %s604_s11, %s17_s11   ;;  %s572_s10 = sphi %s602_s10, %s814_s10   ;;  %s568_s9 = sphi %s600_s9, %s813_s9   ;;  %s564_s8 = sphi %s598_s8, %s812_s8   ;;  %s560_s7 = sphi %s596_s7, %s811_s7   ;;  %s556_s6 = sphi %s594_s6, %s810_s6  }
   0x7   : > { %s29_s14 = sadd.s32 1, %s572_s10  ;;  %s38_s15 = sadd.s32 1, %s564_s8 }
   0x8   : > { %p31_p0 = scmp.ge.s32.totalorder %s29_s14, 2  ;;  %p45_p1 = scmp.ne.s32.totalorder %s564_s8, %s560_s7 }
   0x9   : > { %p46_p2 = scmp.eq.s32.totalorder %s576_s11, 0  ;;  %p51_p3 = scmp.ne.s32.totalorder %s560_s7, %s556_s6 }
   0xa   : > { %s816_s14 = smov (%p31_p0, %s29_s14), 0  ;;  %p52_p5 = scmp.eq.s32.totalorder %s377_s12, 0 }
   0xb   : > { %p635_p4 = por %p46_p2, %p45_p1  ;;  %s33_s17 = ssub.s32 %s572_s10, %s816_s14 }
   0xc   : > { %p77_p6 = scmp.eq.s32.totalorder %s377_s12, 1  ;;  %p36_p7 = scmp.eq.s32.totalorder %s33_s17, 0 }
   0xd   : > { %p641_p8 = por %p52_p5, %p51_p3  ;;  %p83_p10 = scmp.eq.s32.totalorder %s378_s13, 1 }
   0xe   : > { %p645_p9 = por %p77_p6, %p45_p1  ;;  %p410_p13 = scmp.lt.s32.totalorder %s576_s11, 2 }
   0xf   : > { %s650_s20 = scalar_select %p36_p7, %s564_s8, %s38_s15  }
  0x10   : > { %s799_s19 = scalar_select %p645_p9, 1, 0 }
  0x11   : > { %p652_p11 = por %p83_p10, %p51_p3  ;;  %s103_s22 = sand.u32 1, %s564_s8  }
  0x12   : > { %s381_s23 = sshll.u32 %s103_s22, 3  ;;  %s395_s24 = sshll.u32 %s572_s10, 7 }
  0x13   : > { %s800_s21 = scalar_select %p652_p11, 1, 0 }
  0x14   : > { %s663_s27 = scalar_lea.hbm %s794_s0, %s395_s24  ;;  %s107_s28 = scalar_lea.vmem [#allocation2], %s381_s23 }
  0x15   : > { %s117_s29 = sshll.u32 %s107_s28, 4  ;;  %p669_p0 = pnand %p410_p13, %p635_p4  ;;  %s665_s29 = int_to_ptr.vmem [resolvable:$true] %s117_s29 }
  0x16   : > { %s674_s2 = scalar_lea.sflag [#allocation3], %s103_s22  ;;  %s464_s3 = scalar_lea.hbm %s663_s27, 128 }
  0x17   : > { %p465_p2 = scmp.ne.s32.totalorder %s663_s27, %s464_s3  ;;  %p466_p3 = pneg %p669_p0 }
  0x18   : > { %s469_s12 = scalar_lea.hbm %s794_s0, 256  ;;  %p470_p4 = scmp.lt.u32.totalorder %s663_s27, %s794_s0 }
  0x19   : > { %p467_p5 = pnand %p466_p3, %p465_p2  ;;  %p471_p7 = scmp.lt.u32.totalorder %s469_s12, %s464_s3 }
  0x1a   : > { %p473_p13 = scmp.lt.u32.totalorder %s464_s3, %s663_s27 }
  0x1b   : > { %p468_p6 = pneg %p467_p5  ;;  %p472_p10 = por %p471_p7, %p470_p4 }
  0x1d   : > { %p474_p12 = por %p473_p13, %p472_p10 }
  0x1f   : > { %p475_p1 = pnand %p474_p12, %p468_p6 }
  0x21   : > { %478 = shalt.err (!%p475_p1)
}
  0x22   : > { %s479_s16 = scalar_lea.vmem %s665_s29, 128  ;;  %s578_s17 = smov [#allocation2]  }
  0x23   : > { %p480_p2 = scmp.ne.s32.totalorder %s665_s29, %s479_s16  ;;  %s484_s22 = sshll.u32 %s578_s17, 4  ;;  %s485_s22 = int_to_ptr.vmem [resolvable:$false] %s484_s22 }
  0x24   : > { %s486_s23 = scalar_lea.vmem %s485_s22, 256  ;;  %p487_p9 = scmp.lt.s32.totalorder %s665_s29, %s485_s22 }
  0x25   : > { %p482_p5 = pnand %p480_p2, %p466_p3  ;;  %p488_p4 = scmp.lt.s32.totalorder %s486_s23, %s479_s16 }
  0x27   : > { %p483_p11 = pneg %p482_p5  ;;  %p489_p7 = por %p488_p4, %p487_p9 }
  0x29   : > { %p490_p10 = pnand %p489_p7, %p483_p11 }
  0x2b   : > { %493 = shalt.err (!%p490_p10)
}
  0x2c   : > { %s579_s24 = smov 32   ;;  %s580_s25 = smov 2  }
  0x2d   : > { %405 = dma.hbm_to_vmem [thread:$0]  (!%p669_p0), %s663_s27, 128, %s665_s29, %s674_s2, %s579_s24, %s579_s24, %s580_s25  }
  0x2e   : > { %p125_p12 = scmp.lt.s32.totalorder %s576_s11, 3  ;;  %p802_p1 = scmp.ge.s32.totalorder %s576_s11, 1 }
  0x30   : > { %p126_p3 = pnand %p802_p1, %p125_p12 }
  0x31   : > { %s706_s26 = sand.u32 (!%p126_p3), 1, %s560_s7  }
  0x32   : > { %129 = sbr.rel (%p126_p3) target bundleno = 87 (0x57), region = 24  ;;  %s386_s28 = sshll.u32 (!%p126_p3), %s706_s26, 3 }
  0x33   : > { %s132_s3 = scalar_lea.sflag (!%p126_p3), [#allocation3], %s706_s26  ;;  %s135_s4 = scalar_lea.vmem (!%p126_p3), [#allocation2], %s386_s28 }
  0x39   : > { %547 = dma.done.wait (%p641_p8), %s132_s3, 128  }
  0x3a   : > { %549 = vsyncadd (%p641_p8), %s132_s3, 4294967168  ;;  %v162_v0 = vlaneseq  ;;  %s387_s27 = sshll.u32 %s706_s26, 5  ;;  %v158_v8 = vld [vmem:[%s135_s4] sm:$0x3]  ;;  %v159_v10 = vld [vmem:[%s135_s4 + $0x2] sm:$0x3] }
  0x3b   : > { %v160_v11 = vld [vmem:[%s135_s4 + $0x4] sm:$0x3]  ;;  %v161_v16 = vld [vmem:[%s135_s4 + $0x6] sm:$0x3]  ;;  %s153_s18 = scalar_lea.vmem [#allocation5], %s387_s27  ;;  %s397_s30 = sshll.u32 %s568_s9, 9 }
  0x3c   : > { %v163_v1 = vand.u32 127, %v162_v0  ;;  %v194_v2 = vshrl.u32 %v162_v0, 7  ;;  %s290_s29 = sshll.u32 %s153_s18, 4  ;;  %s745_s5 = scalar_lea.hbm %s795_s1, %s397_s30  ;;  %s736_s29 = int_to_ptr.vmem [resolvable:$true] %s290_s29 }
  0x3d   : > { %s274_s12 = scalar_lea.sflag [#allocation4], %s706_s26  ;;  %s494_s13 = scalar_lea.vmem %s736_s29, 512 }
  0x3e   : > { %v164_v3 = vadd.s32 128, %v163_v1  ;;  %v173_v4 = vand.u32 15, %v163_v1  ;;  %v207_v5 = vsub.s32 0, %v194_v2  ;;  %v211_v6 = vsub.s32 1, %v194_v2  ;;  %p495_p8 = scmp.ne.s32.totalorder %s736_s29, %s494_s13  ;;  %p807_p9 = scmp.ne.s32.totalorder %s799_s19, 0 }
  0x3f   : > { %s581_s15 = smov [#allocation5]  }
  0x40   : > { %v180_v7 = vand.u32 15, %v164_v3  ;;  %vm715_vm0 = vcmp.ge.s32.totalorder %v173_v4, %v194_v2  ;;  %v208_v13 = vrot.slane %v158_v8, %v207_v5  ;;  %v212_v14 = vrot.slane %v158_v8, %v211_v6  ;;  %p496_p11 = pnand %p495_p8, %p807_p9  ;;  %s498_s16 = sshll.u32 %s581_s15, 4  ;;  %s499_s16 = int_to_ptr.vmem [resolvable:$false] %s498_s16 }
  0x41   : > { %v216_v15 = vrot.slane %v159_v10, %v207_v5  ;;  %v220_v17 = vrot.slane %v159_v10, %v211_v6  ;;  %v224_v18 = vrot.slane %v160_v11, %v207_v5  ;;  %v228_v19 = vrot.slane %v160_v11, %v211_v6  ;;  %s500_s17 = scalar_lea.vmem %s499_s16, 1024  ;;  %p501_p6 = scmp.lt.s32.totalorder %s736_s29, %s499_s16 }
  0x42   : > { %vm719_vm1 = vcmp.ge.s32.totalorder %v180_v7, %v194_v2  ;;  %v232_v20 = vrot.slane %v161_v16, %v207_v5  ;;  %v245_v21 = vsel %vm715_vm0, %v208_v13, 0.0  ;;  %v236_v24 = vrot.slane %v161_v16, %v211_v6  ;;  %p497_p0 = pneg %p496_p11  ;;  %p502_p13 = scmp.lt.s32.totalorder %s500_s17, %s494_s13 }
  0x43   : > { %v246_v22 = vsel %vm719_vm1, %v212_v14, 0.0  ;;  %v247_v23 = vsel %vm715_vm0, %v216_v15, 0.0  ;;  %v248_v26 = vsel %vm719_vm1, %v220_v17, 0.0  ;;  %v249_v27 = vsel %vm715_vm0, %v224_v18, 0.0 }
  0x44   : > { %v261_v25 = vcombine.low %v245_v21, %v246_v22  ;;  %v250_v28 = vsel %vm719_vm1, %v228_v19, 0.0  ;;  %v262_v29 = vcombine.low %v247_v23, %v248_v26  ;;  %v251_v31 = vsel %vm715_vm0, %v232_v20, 0.0  ;;  %p503_p2 = por %p502_p13, %p501_p6 }
  0x45   : > { %v263_v30 = vcombine.low %v249_v27, %v250_v28  ;;  %v252_v32 = vsel %vm719_vm1, %v236_v24, 0.0 }
  0x46   : > { %269 = vst [vmem:[%s153_s18] sm:$0xff] %v261_v25  ;;  %v264_v33 = vcombine.low %v251_v31, %v252_v32  ;;  %270 = vst [vmem:[%s153_s18 + $0x8] sm:$0xff] %v262_v29  ;;  %p504_p5 = pnand %p503_p2, %p497_p0 }
  0x47   : > { %271 = vst [vmem:[%s153_s18 + $0x10] sm:$0xff] %v263_v30 }
  0x48   : > { %272 = vst [vmem:[%s153_s18 + $0x18] sm:$0xff] %v264_v33 }
  0x49   : > { %507 = shalt.err (!%p504_p5)
}
  0x4a   : > { %s508_s22 = scalar_lea.hbm %s745_s5, 512  ;;  %s512_s25 = scalar_lea.hbm %s795_s1, 1024 }
  0x4b   : > { %p509_p4 = scmp.ne.s32.totalorder %s745_s5, %s508_s22  ;;  %p513_p12 = scmp.lt.u32.totalorder %s745_s5, %s795_s1 }
  0x4c   : > { %p514_p1 = scmp.lt.u32.totalorder %s512_s25, %s508_s22  ;;  %p516_p8 = scmp.lt.u32.totalorder %s508_s22, %s745_s5 }
  0x4d   : > { %p510_p7 = pnand %p509_p4, %p807_p9 }
  0x4e   : > { %p515_p3 = por %p514_p1, %p513_p12 }
  0x4f   : > { %p511_p10 = pneg %p510_p7 }
  0x50   : > { %p517_p11 = por %p516_p8, %p515_p3 }
  0x52   : > { %p518_p0 = pnand %p517_p11, %p511_p10 }
  0x54   : > { %521 = shalt.err (!%p518_p0)
}
  0x55   : > { %s582_s4 = smov 128   ;;  %s583_s27 = smov 8  }
  0x56   : > { %400 = dma.vmem_to_hbm [thread:$0]  (%p807_p9), %s736_s29, 512, %s745_s5, %s274_s12, %s582_s4, %s582_s4, %s583_s27  }
  0x57 PF: > { %s305_s18 = sand.u32 1, %s556_s6   ;;  %p808_p6 = scmp.ne.s32.totalorder %s800_s21, 0 }
  0x58   : > { %p809_p13 = scmp.ge.s32.totalorder %s576_s11, 2  ;;  %s306_s30 = scalar_lea.sflag [#allocation4], %s305_s18 }
  0x5a   : > { %p407_p2 = pnand %p809_p13, %p808_p6 }
  0x5c   : > { %551 = dma.done.wait (!%p407_p2), %s306_s30, 512  }
  0x5d   : > { %553 = vsyncadd (!%p407_p2), %s306_s30, 4294966784  ;;  %s17_s11 = sadd.s32 1, %s576_s11   ;;  %s810_s6 = smov %s560_s7 }
  0x5e   : > { %p14_p5 = scmp.ge.s32.totalorder %s17_s11, 4   ;;  %s811_s7 = smov %s564_s8 }
  0x5f   : > { %s812_s8 = smov %s650_s20  ;;  %s813_s9 = smov %s572_s10 }
  0x60   : > { %s814_s10 = smov %s816_s14  ;;  %16 = sbr.rel (!%p14_p5) target bundleno = 6 (0x6), region = 69 }
  0x67   :  { %311 = vsyncpa [#allocation3], 1 }
  0x68   :  { %313 = vsyncpa [#allocation3 + $0x1], 1 }
  0x69   :  { %314 = vsyncpa [#allocation4], 1 }
  0x6a   :  { %316 = vsyncpa [#allocation4 + $0x1], 1 }

</bundles_post_ra>
